<compile_context>
chip_gen: v7x
topology: tpu7x:2x2x1
jax: 0.10.0
libtpu: 0.0.40
codegen_flags: <defaults>
</compile_context>

<pallas_src>
import functools

import jax
import jax.numpy as jnp
from jax import lax
from jax.experimental import pallas as pl
from jax.experimental.pallas import tpu as pltpu

BN_EPS = 1e-5
NEG_SLOPE = 0.2
LANE = 128
TILE_M_MAX = 512


def _round_up(x, m):
    return (x + m - 1) // m * m


def _conv_stats_kernel(w_ref, p_ref, y_ref, sum_ref, ssq_ref):
    """Phase 1: y = W @ patches^T (OC, tile_m); accumulate per-channel sum/sumsq."""
    i = pl.program_id(0)

    @pl.when(i == 0)
    def _():
        sum_ref[...] = jnp.zeros_like(sum_ref)
        ssq_ref[...] = jnp.zeros_like(ssq_ref)

    y = jnp.dot(w_ref[...], p_ref[...], preferred_element_type=jnp.float32)
    y_ref[...] = y
    sum_ref[...] += jnp.sum(y, axis=1, keepdims=True)
    ssq_ref[...] += jnp.sum(y * y, axis=1, keepdims=True)


def _bn_lrelu_kernel(y_ref, sum_ref, ssq_ref, gamma_ref, beta_ref, out_ref, *, inv_m):
    """Phase 2: BatchNorm (batch stats, biased var) + LeakyReLU(0.2), lane-dense."""
    mean = sum_ref[...] * inv_m                        # (OC, 1)
    var = ssq_ref[...] * inv_m - mean * mean           # one-pass biased variance
    inv_std = lax.rsqrt(var + BN_EPS)
    scale = gamma_ref[...] * inv_std                   # fold gamma * inv_std
    shift = beta_ref[...] - mean * scale
    y = y_ref[...] * scale + shift                     # single fma per element
    out_ref[...] = jnp.where(y >= 0.0, y, NEG_SLOPE * y)


def _im2col_t(x, kh, kw, stride, padding):
    """x: (N, C, H, W) -> patches^T of shape (K, M) = (C*KH*KW, N*OH*OW)."""
    n, c, h, w = x.shape
    xp = jnp.pad(x, ((0, 0), (0, 0), (padding, padding), (padding, padding)))
    oh = (h + 2 * padding - kh) // stride + 1
    ow = (w + 2 * padding - kw) // stride + 1
    cols = []
    for i in range(kh):
        for j in range(kw):
            sl = lax.slice(
                xp,
                (0, 0, i, j),
                (n, c, i + stride * (oh - 1) + 1, j + stride * (ow - 1) + 1),
                (1, 1, stride, stride),
            )  # (N, C, OH, OW)
            cols.append(sl)
    # (N, C, KH*KW, OH, OW) -> (C, KH*KW, N, OH, OW) -> (K, M)
    pt = jnp.stack(cols, axis=2).transpose(1, 2, 0, 3, 4)
    return pt.reshape(c * kh * kw, n * oh * ow), oh, ow


@functools.partial(jax.jit, static_argnames=("stride", "padding"))
def cbl_forward(x, weight, bias, gamma, beta, *, stride, padding):
    """x: (N, C, H, W) f32; weight: (OC, C, KH, KW); returns (N, OC, OH, OW)."""
    del bias  # cancels exactly under training-mode BatchNorm mean subtraction
    oc, c, kh, kw = weight.shape
    n = x.shape[0]

    patches_t, oh, ow = _im2col_t(x, kh, kw, stride, padding)  # (K, M)
    K, M = patches_t.shape

    tile_m = min(TILE_M_MAX, _round_up(M, LANE))
    m_pad = _round_up(M, tile_m)
    if m_pad != M:
        patches_t = jnp.pad(patches_t, ((0, 0), (0, m_pad - M)))
    num_tiles = m_pad // tile_m

    w_mat = weight.reshape(oc, K)  # (OC, K); columns match patch row ordering

    # Phase 1: conv-as-matmul, lane-dense (OC, M) output + resident stat accumulators.
    y, ch_sum, ch_ssq = pl.pallas_call(
        _conv_stats_kernel,
        out_shape=(
            jax.ShapeDtypeStruct((oc, m_pad), jnp.float32),
            jax.ShapeDtypeStruct((oc, 1), jnp.float32),
            jax.ShapeDtypeStruct((oc, 1), jnp.float32),
        ),
        grid=(num_tiles,),
        in_specs=[
            pl.BlockSpec((oc, K), lambda i: (0, 0)),        # weights resident
            pl.BlockSpec((K, tile_m), lambda i: (0, i)),    # stream patch tiles
        ],
        out_specs=(
            pl.BlockSpec((oc, tile_m), lambda i: (0, i)),
            pl.BlockSpec((oc, 1), lambda i: (0, 0)),        # accumulator
            pl.BlockSpec((oc, 1), lambda i: (0, 0)),        # accumulator
        ),
        compiler_params=pltpu.CompilerParams(
            dimension_semantics=("arbitrary",)),
    )(w_mat, patches_t)

    # Phase 2: normalize + LeakyReLU; embarrassingly parallel over M tiles.
    out_flat = pl.pallas_call(
        functools.partial(_bn_lrelu_kernel, inv_m=1.0 / M),
        out_shape=jax.ShapeDtypeStruct((oc, m_pad), jnp.float32),
        grid=(num_tiles,),
        in_specs=[
            pl.BlockSpec((oc, tile_m), lambda i: (0, i)),
            pl.BlockSpec((oc, 1), lambda i: (0, 0)),
            pl.BlockSpec((oc, 1), lambda i: (0, 0)),
            pl.BlockSpec((oc, 1), lambda i: (0, 0)),
            pl.BlockSpec((oc, 1), lambda i: (0, 0)),
        ],
        out_specs=pl.BlockSpec((oc, tile_m), lambda i: (0, i)),
        compiler_params=pltpu.CompilerParams(
            dimension_semantics=("parallel",)),
    )(y, ch_sum, ch_ssq, gamma.reshape(oc, 1), beta.reshape(oc, 1))

    # (OC, M_pad) -> (OC, M) -> (N, OC, OH, OW): cheap leading-axis swap.
    return out_flat[:, :M].reshape(oc, n, oh, ow).transpose(1, 0, 2, 3)


def _reference(x, weight, bias, gamma, beta, stride, padding):
    """Plain-JAX reference mirroring PyTorch Conv2d + BN(train) + LeakyReLU."""
    y = lax.conv_general_dilated(
        x,
        weight,
        window_strides=(stride, stride),
        padding=((padding, padding), (padding, padding)),
        dimension_numbers=("NCHW", "OIHW", "NCHW"),
        preferred_element_type=jnp.float32,
        precision=lax.Precision.HIGHEST,
    )
    y = y + bias.reshape(1, -1, 1, 1)
    mean = jnp.mean(y, axis=(0, 2, 3), keepdims=True)
    var = jnp.mean((y - mean) ** 2, axis=(0, 2, 3), keepdims=True)
    y = (y - mean) * lax.rsqrt(var + BN_EPS)
    y = y * gamma.reshape(1, -1, 1, 1) + beta.reshape(1, -1, 1, 1)
    return jnp.where(y >= 0.0, y, NEG_SLOPE * y)


if __name__ == "__main__":
    # CBL(input_channel=4, output_channel=8, kernel_size=4, stride=2, padding=1)
    N, C, H, W = 2, 4, 16, 16
    OC, KH, KW = 8, 4, 4
    STRIDE, PAD = 2, 1

    key = jax.random.PRNGKey(0)
    kx, kw_, kb, kg, kbt = jax.random.split(key, 5)

    x = jax.random.normal(kx, (N, C, H, W), dtype=jnp.float32)
    weight = 0.1 * jax.random.normal(kw_, (OC, C, KH, KW), dtype=jnp.float32)
    bias = 0.1 * jax.random.normal(kb, (OC,), dtype=jnp.float32)
    gamma = 1.0 + 0.1 * jax.random.normal(kg, (OC,), dtype=jnp.float32)
    beta = 0.1 * jax.random.normal(kbt, (OC,), dtype=jnp.float32)

    out = cbl_forward(x, weight, bias, gamma, beta, stride=STRIDE, padding=PAD)
    out = jax.block_until_ready(out)

    ref = _reference(x, weight, bias, gamma, beta, STRIDE, PAD)
    assert out.shape == (N, OC, H // 2, W // 2), out.shape
    assert jnp.allclose(out, ref, atol=2e-3, rtol=2e-3), float(
        jnp.max(jnp.abs(out - ref))
    )

    print("KERNEL_OK")
</pallas_src>

<mosaic_0001>
module attributes {stable_mosaic.version = 11 : i64} {
  func.func @_conv_stats_kernel(%arg0: i32, %arg1: memref<8x64xf32, #tpu.memory_space<vmem>>, %arg2: memref<64x128xf32, #tpu.memory_space<vmem>>, %arg3: memref<8x128xf32, #tpu.memory_space<vmem>>, %arg4: memref<8x1xf32, #tpu.memory_space<vmem>>, %arg5: memref<8x1xf32, #tpu.memory_space<vmem>>) attributes {dimension_semantics = [#tpu.dimension_semantics<arbitrary>], iteration_bounds = array<i64: 1>, scalar_prefetch = 0 : i64, scratch_operands = 0 : i64, tpu.core_type = #tpu.core_type<tc>, window_params = [{pipeline_mode = #tpu.pipeline_mode<synchronous>, transform_indices = @transform_0, window_bounds = array<i64: 8, 64>}, {transform_indices = @transform_1, window_bounds = array<i64: 64, 128>}, {transform_indices = @transform_2, window_bounds = array<i64: 8, 128>}, {pipeline_mode = #tpu.pipeline_mode<synchronous>, transform_indices = @transform_3, window_bounds = array<i64: 8, 1>}, {pipeline_mode = #tpu.pipeline_mode<synchronous>, transform_indices = @transform_4, window_bounds = array<i64: 8, 1>}]} {
    %c0_i32 = arith.constant 0 : i32
    %0 = arith.cmpi eq, %arg0, %c0_i32 : i32
    %1 = arith.extui %0 : i1 to i32
    %c0_i32_0 = arith.constant 0 : i32
    %2 = arith.cmpi ne, %1, %c0_i32_0 : i32
    scf.if %2 {
      %cst_16 = arith.constant 0.000000e+00 : f32
      %18 = vector.broadcast %cst_16 : f32 to vector<8x1xf32>
      %c0_17 = arith.constant 0 : index
      %c0_18 = arith.constant 0 : index
      %19 = vector.load %arg4[%c0_17, %c0_18] : memref<8x1xf32, #tpu.memory_space<vmem>>, vector<8x1xf32>
      tpu.vector_store %arg4[%c0_17, %c0_18], %18 {strides = array<i32>} : memref<8x1xf32, #tpu.memory_space<vmem>>, vector<8x1xf32>,
      %cst_19 = arith.constant 0.000000e+00 : f32
      %20 = vector.broadcast %cst_19 : f32 to vector<8x1xf32>
      %c0_20 = arith.constant 0 : index
      %c0_21 = arith.constant 0 : index
      %21 = vector.load %arg5[%c0_20, %c0_21] : memref<8x1xf32, #tpu.memory_space<vmem>>, vector<8x1xf32>
      tpu.vector_store %arg5[%c0_20, %c0_21], %20 {strides = array<i32>} : memref<8x1xf32, #tpu.memory_space<vmem>>, vector<8x1xf32>,
    } else {
    }
    %c0 = arith.constant 0 : index
    %c0_1 = arith.constant 0 : index
    %3 = vector.load %arg1[%c0, %c0_1] : memref<8x64xf32, #tpu.memory_space<vmem>>, vector<8x64xf32>
    %c0_2 = arith.constant 0 : index
    %c0_3 = arith.constant 0 : index
    %4 = vector.load %arg2[%c0_2, %c0_3] : memref<64x128xf32, #tpu.memory_space<vmem>>, vector<64x128xf32>
    %cst = arith.constant dense<0.000000e+00> : vector<8x128xf32>
    %5 = tpu.matmul %3, %4, %cst {dimension_numbers = #tpu.dot_dimension_numbers<[1], [0], [0], [1], [0, 0, 1, 1], [], []>} : vector<8x64xf32>, vector<64x128xf32>, vector<8x128xf32> -> vector<8x128xf32>
    %c0_4 = arith.constant 0 : index
    %c0_5 = arith.constant 0 : index
    %6 = vector.load %arg3[%c0_4, %c0_5] : memref<8x128xf32, #tpu.memory_space<vmem>>, vector<8x128xf32>
    tpu.vector_store %arg3[%c0_4, %c0_5], %5 {strides = array<i32>} : memref<8x128xf32, #tpu.memory_space<vmem>>, vector<8x128xf32>,
    %c0_6 = arith.constant 0 : index
    %c0_7 = arith.constant 0 : index
    %7 = vector.load %arg4[%c0_6, %c0_7] : memref<8x1xf32, #tpu.memory_space<vmem>>, vector<8x1xf32>
    %cst_8 = arith.constant dense<0.000000e+00> : vector<8xf32>
    %8 = vector.multi_reduction <add>, %5, %cst_8 [1] : vector<8x128xf32> to vector<8xf32>
    %9 = vector.shape_cast %8 : vector<8xf32> to vector<8x1xf32>
    %10 = arith.addf %7, %9 : vector<8x1xf32>
    %c0_9 = arith.constant 0 : index
    %c0_10 = arith.constant 0 : index
    %11 = vector.load %arg4[%c0_9, %c0_10] : memref<8x1xf32, #tpu.memory_space<vmem>>, vector<8x1xf32>
    tpu.vector_store %arg4[%c0_9, %c0_10], %10 {strides = array<i32>} : memref<8x1xf32, #tpu.memory_space<vmem>>, vector<8x1xf32>,
    %c0_11 = arith.constant 0 : index
    %c0_12 = arith.constant 0 : index
    %12 = vector.load %arg5[%c0_11, %c0_12] : memref<8x1xf32, #tpu.memory_space<vmem>>, vector<8x1xf32>
    %13 = arith.mulf %5, %5 : vector<8x128xf32>
    %cst_13 = arith.constant dense<0.000000e+00> : vector<8xf32>
    %14 = vector.multi_reduction <add>, %13, %cst_13 [1] : vector<8x128xf32> to vector<8xf32>
    %15 = vector.shape_cast %14 : vector<8xf32> to vector<8x1xf32>
    %16 = arith.addf %12, %15 : vector<8x1xf32>
    %c0_14 = arith.constant 0 : index
    %c0_15 = arith.constant 0 : index
    %17 = vector.load %arg5[%c0_14, %c0_15] : memref<8x1xf32, #tpu.memory_space<vmem>>, vector<8x1xf32>
    tpu.vector_store %arg5[%c0_14, %c0_15], %16 {strides = array<i32>} : memref<8x1xf32, #tpu.memory_space<vmem>>, vector<8x1xf32>,
    return
  }
  func.func @transform_0(%arg0: i32) -> (i32, i32) {
    %c0_i32 = arith.constant 0 : i32
    %c0_i32_0 = arith.constant 0 : i32
    %c0_i32_1 = arith.constant 0 : i32
    return %c0_i32, %c0_i32_0 : i32, i32
  }
  func.func @transform_1(%arg0: i32) -> (i32, i32) {
    %c0_i32 = arith.constant 0 : i32
    %c0_i32_0 = arith.constant 0 : i32
    return %c0_i32, %arg0 : i32, i32
  }
  func.func @transform_2(%arg0: i32) -> (i32, i32) {
    %c0_i32 = arith.constant 0 : i32
    %c0_i32_0 = arith.constant 0 : i32
    return %c0_i32, %arg0 : i32, i32
  }
  func.func @transform_3(%arg0: i32) -> (i32, i32) {
    %c0_i32 = arith.constant 0 : i32
    %c0_i32_0 = arith.constant 0 : i32
    %c0_i32_1 = arith.constant 0 : i32
    return %c0_i32, %c0_i32_0 : i32, i32
  }
  func.func @transform_4(%arg0: i32) -> (i32, i32) {
    %c0_i32 = arith.constant 0 : i32
    %c0_i32_0 = arith.constant 0 : i32
    %c0_i32_1 = arith.constant 0 : i32
    return %c0_i32, %c0_i32_0 : i32, i32
  }
}

module attributes {stable_mosaic.version = 11 : i64} {
  func.func @_bn_lrelu_kernel(%arg0: i32, %arg1: memref<8x128xf32, #tpu.memory_space<vmem>>, %arg2: memref<8x1xf32, #tpu.memory_space<vmem>>, %arg3: memref<8x1xf32, #tpu.memory_space<vmem>>, %arg4: memref<8x1xf32, #tpu.memory_space<vmem>>, %arg5: memref<8x1xf32, #tpu.memory_space<vmem>>, %arg6: memref<8x128xf32, #tpu.memory_space<vmem>>) attributes {dimension_semantics = [#tpu.dimension_semantics<parallel>], iteration_bounds = array<i64: 1>, scalar_prefetch = 0 : i64, scratch_operands = 0 : i64, tpu.core_type = #tpu.core_type<tc>, window_params = [{transform_indices = @transform_0, window_bounds = array<i64: 8, 128>}, {pipeline_mode = #tpu.pipeline_mode<synchronous>, transform_indices = @transform_1, window_bounds = array<i64: 8, 1>}, {pipeline_mode = #tpu.pipeline_mode<synchronous>, transform_indices = @transform_2, window_bounds = array<i64: 8, 1>}, {pipeline_mode = #tpu.pipeline_mode<synchronous>, transform_indices = @transform_3, window_bounds = array<i64: 8, 1>}, {pipeline_mode = #tpu.pipeline_mode<synchronous>, transform_indices = @transform_4, window_bounds = array<i64: 8, 1>}, {transform_indices = @transform_5, window_bounds = array<i64: 8, 128>}]} {
    %c0 = arith.constant 0 : index
    %c0_0 = arith.constant 0 : index
    %0 = vector.load %arg2[%c0, %c0_0] : memref<8x1xf32, #tpu.memory_space<vmem>>, vector<8x1xf32>
    %cst = arith.constant 7.812500e-03 : f32
    %1 = vector.broadcast %cst : f32 to vector<8x1xf32>
    %2 = arith.mulf %0, %1 : vector<8x1xf32>
    %c0_1 = arith.constant 0 : index
    %c0_2 = arith.constant 0 : index
    %3 = vector.load %arg3[%c0_1, %c0_2] : memref<8x1xf32, #tpu.memory_space<vmem>>, vector<8x1xf32>
    %cst_3 = arith.constant 7.812500e-03 : f32
    %4 = vector.broadcast %cst_3 : f32 to vector<8x1xf32>
    %5 = arith.mulf %3, %4 : vector<8x1xf32>
    %6 = arith.mulf %2, %2 : vector<8x1xf32>
    %7 = arith.subf %5, %6 : vector<8x1xf32>
    %cst_4 = arith.constant 9.99999974E-6 : f32
    %8 = vector.broadcast %cst_4 : f32 to vector<8x1xf32>
    %9 = arith.addf %7, %8 : vector<8x1xf32>
    %10 = math.rsqrt %9 : vector<8x1xf32>
    %c0_5 = arith.constant 0 : index
    %c0_6 = arith.constant 0 : index
    %11 = vector.load %arg4[%c0_5, %c0_6] : memref<8x1xf32, #tpu.memory_space<vmem>>, vector<8x1xf32>
    %12 = arith.mulf %11, %10 : vector<8x1xf32>
    %c0_7 = arith.constant 0 : index
    %c0_8 = arith.constant 0 : index
    %13 = vector.load %arg5[%c0_7, %c0_8] : memref<8x1xf32, #tpu.memory_space<vmem>>, vector<8x1xf32>
    %14 = arith.mulf %2, %12 : vector<8x1xf32>
    %15 = arith.subf %13, %14 : vector<8x1xf32>
    %c0_9 = arith.constant 0 : index
    %c0_10 = arith.constant 0 : index
    %16 = vector.load %arg1[%c0_9, %c0_10] : memref<8x128xf32, #tpu.memory_space<vmem>>, vector<8x128xf32>
    %17 = vector.broadcast %12 : vector<8x1xf32> to vector<8x128xf32>
    %18 = arith.mulf %16, %17 : vector<8x128xf32>
    %19 = vector.broadcast %15 : vector<8x1xf32> to vector<8x128xf32>
    %20 = arith.addf %18, %19 : vector<8x128xf32>
    %cst_11 = arith.constant 0.000000e+00 : f32
    %21 = vector.broadcast %cst_11 : f32 to vector<8x128xf32>
    %22 = arith.cmpf oge, %20, %21 : vector<8x128xf32>
    %cst_12 = arith.constant 2.000000e-01 : f32
    %23 = vector.broadcast %cst_12 : f32 to vector<8x128xf32>
    %24 = arith.mulf %23, %20 : vector<8x128xf32>
    %25 = arith.select %22, %20, %24 : vector<8x128xi1>, vector<8x128xf32>
    %c0_13 = arith.constant 0 : index
    %c0_14 = arith.constant 0 : index
    %26 = vector.load %arg6[%c0_13, %c0_14] : memref<8x128xf32, #tpu.memory_space<vmem>>, vector<8x128xf32>
    tpu.vector_store %arg6[%c0_13, %c0_14], %25 {strides = array<i32>} : memref<8x128xf32, #tpu.memory_space<vmem>>, vector<8x128xf32>,
    return
  }
  func.func @transform_0(%arg0: i32) -> (i32, i32) {
    %c0_i32 = arith.constant 0 : i32
    %c0_i32_0 = arith.constant 0 : i32
    return %c0_i32, %arg0 : i32, i32
  }
  func.func @transform_1(%arg0: i32) -> (i32, i32) {
    %c0_i32 = arith.constant 0 : i32
    %c0_i32_0 = arith.constant 0 : i32
    %c0_i32_1 = arith.constant 0 : i32
    return %c0_i32, %c0_i32_0 : i32, i32
  }
  func.func @transform_2(%arg0: i32) -> (i32, i32) {
    %c0_i32 = arith.constant 0 : i32
    %c0_i32_0 = arith.constant 0 : i32
    %c0_i32_1 = arith.constant 0 : i32
    return %c0_i32, %c0_i32_0 : i32, i32
  }
  func.func @transform_3(%arg0: i32) -> (i32, i32) {
    %c0_i32 = arith.constant 0 : i32
    %c0_i32_0 = arith.constant 0 : i32
    %c0_i32_1 = arith.constant 0 : i32
    return %c0_i32, %c0_i32_0 : i32, i32
  }
  func.func @transform_4(%arg0: i32) -> (i32, i32) {
    %c0_i32 = arith.constant 0 : i32
    %c0_i32_0 = arith.constant 0 : i32
    %c0_i32_1 = arith.constant 0 : i32
    return %c0_i32, %c0_i32_0 : i32, i32
  }
  func.func @transform_5(%arg0: i32) -> (i32, i32) {
    %c0_i32 = arith.constant 0 : i32
    %c0_i32_0 = arith.constant 0 : i32
    return %c0_i32, %arg0 : i32, i32
  }
}

</mosaic_0001>

<bundles_post_ra>
// kernel: cbl_forward.2
= control target key start
LH: loop header
LB: loop body
LE: loop exit
PB: predicated region body
PF: predicated region fallthrough
CT: control target
= control target key end

     0   :  { %v173_v0 = vmov 0.0|0.0   ;;  %vm174_vm0 = vmmov 0   ;;  %v175_v4 = vmov 0.0   ;;  %vm30_vm1 = vcmask 523264   ;;  %s253_s1 = inlined_call_operand.vmem [shape: f32[64,128], index: 1, kind: input, shape index: {}]   ;;  %s254_s0 = inlined_call_operand.vmem [shape: f32[8,64], index: 0, kind: input, shape index: {}]   ;;  %s255_s3 = inlined_call_operand.vmem [shape: f32[8,1], index: 3, kind: output, shape index: {1}]   ;;  %s256_s2 = inlined_call_operand.vmem [shape: f32[8,128], index: 2, kind: output, shape index: {0}]   ;;  %s257_s4 = inlined_call_operand.vmem [shape: f32[8,1], index: 4, kind: output, shape index: {2}]  }
   0x1   :  { %158 = vmatprep.subr.bf16.mxu0 %v173_v0  ;;  %v22_v1 = vld [vmem:[%s253_s1] sm:$0xff]  ;;  %v23_v2 = vld [vmem:[%s253_s1 + $0x8] sm:$0xff]  ;;  %v24_v3 = vld [vmem:[%s253_s1 + $0x10] sm:$0xff]  ;;  %155 = vmatprep.mubr.msk.f32.mxu0 %vm174_vm0, %v175_v4  ;;  %vm18_vm2 = vcmask 7168  }
   0x2   :  { %v159_v5 = vpack.c.bf16 %v23_v2, %v22_v1  ;;  %v25_v6 = vld [vmem:[%s253_s1 + $0x18] sm:$0xff]  ;;  %v26_v8 = vld [vmem:[%s253_s1 + $0x20] sm:$0xff]  ;;  %v27_v9 = vld [vmem:[%s253_s1 + $0x28] sm:$0xff]  ;;  %19 = vst.msk [vmem:[%s255_s3] sm:$0xff] %vm18_vm2, %v175_v4 }
   0x3   :  { %v162_v7 = vpack.c.bf16 %v25_v6, %v24_v3  ;;  %v165_v10 = vpack.c.bf16 %v27_v9, %v26_v8  ;;  %v28_v11 = vld [vmem:[%s253_s1 + $0x30] sm:$0xff]  ;;  %v29_v12 = vld [vmem:[%s253_s1 + $0x38] sm:$0xff]  ;;  %v21_v14 = vld [vmem:[%s254_s0] sm:$0xff]  ;;  %20 = vst.msk [vmem:[%s257_s4] sm:$0xff] %vm18_vm2, %v175_v4 }
   0x4   :  { %160 = vmatpush3.bf16.msra.mxu0 %v159_v5  ;;  %v168_v13 = vpack.c.bf16 %v29_v12, %v28_v11 }
   0x5   :  { %161 = vmatprep.subr.bf16.mxu0 %v173_v0 }
   0x8   :  { %163 = vmatpush3.bf16.msra.mxu0 %v162_v7 }
   0x9   :  { %164 = vmatprep.subr.bf16.mxu0 %v173_v0  ;;  %v105_v18 = vld [vmem:[%s255_s3] sm:$0xff] }
   0xa   :  { %v111_v21 = vld [vmem:[%s257_s4] sm:$0xff] }
   0xc   :  { %166 = vmatpush3.bf16.msra.mxu0 %v165_v10 }
   0xd   :  { %167 = vmatprep.subr.bf16.mxu0 %v173_v0 }
  0x10   :  { %169 = vmatpush3.bf16.msra.mxu0 %v168_v13 }
  0x13   :  { %156 = vmatmul.mubr.msk.f32.vlgmr.msra.gmra.mrb[0].mxu0 %vm30_vm1, %v21_v14 }
  0xe6   :  { %v100_v15 = vpop.f32.mrb[0].mxu0 }
  0xe7   :  { %104 = vst [vmem:[%s256_s2] sm:$0xff] %v100_v15  ;;  %106 = vadd.xlane.f32.xlu0 %v100_v15  ;;  %v157_v16 = vpop.f32.mrb[1].mxu0  ;;  %v112_v17 = vmul.f32 %v100_v15, %v100_v15 }
  0xeb   :  { %113 = vadd.xlane.f32.xlu0 %v112_v17 }
 0x174   :  { %v107_v19 = vpop.xlane.xlu0 %106 }
 0x175   :  { %v108_v20 = vadd.f32 %v107_v19, %v105_v18 }
 0x177   :  { %110 = vst.msk [vmem:[%s255_s3] sm:$0xff] %vm18_vm2, %v108_v20 }
 0x178   :  { %v114_v22 = vpop.xlane.xlu0 %113 }
 0x179   :  { %v115_v23 = vadd.f32 %v114_v22, %v111_v21 }
 0x17b   :  { %116 = vst.msk [vmem:[%s257_s4] sm:$0xff] %vm18_vm2, %v115_v23 }

// kernel: cbl_forward.3
= control target key start
LH: loop header
LB: loop body
LE: loop exit
PB: predicated region body
PF: predicated region fallthrough
CT: control target
= control target key end

     0   :  { %v58_v0 = vmov 0   ;;  %s107_s1 = inlined_call_operand.vmem [shape: f32[8,1], index: 1, kind: input, shape index: {}]   ;;  %s108_s2 = inlined_call_operand.vmem [shape: f32[8,1], index: 2, kind: input, shape index: {}]   ;;  %s109_s3 = inlined_call_operand.vmem [shape: f32[8,1], index: 3, kind: input, shape index: {}]   ;;  %s110_s4 = inlined_call_operand.vmem [shape: f32[8,1], index: 4, kind: input, shape index: {}]   ;;  %s111_s0 = inlined_call_operand.vmem [shape: f32[8,128], index: 0, kind: input, shape index: {}]   ;;  %s112_s5 = inlined_call_operand.vmem [shape: f32[8,128], index: 5, kind: output, shape index: {}]  }
   0x1   :  { %55 = vset.pattern.permute.xlu0 %v58_v0  ;;  %v20_v1 = vld [vmem:[%s107_s1] sm:$0xff] }
   0x2   :  { %v22_v2 = vld [vmem:[%s108_s2] sm:$0xff]  ;;  %v21_v3 = vmul.f32 0.0078125, %v20_v1 }
   0x3   :  { %v23_v4 = vmul.f32 0.0078125, %v22_v2  ;;  %v28_v8 = vld [vmem:[%s109_s3] sm:$0xff] }
   0x4   :  { %v24_v5 = vmul.f32 %v21_v3, %v21_v3  ;;  %v30_v11 = vld [vmem:[%s110_s4] sm:$0xff] }
   0x5   :  { %v33_v15 = vld [vmem:[%s111_s0] sm:$0xff] }
   0x6   :  { %v25_v6 = vsub.f32 %v23_v4, %v24_v5 }
   0x8   :  { %v26_v7 = vadd.f32 1e-05, %v25_v6 }
   0xa   :  { %56 = vrsqrt.f32 %v26_v7 }
  0x14   :  { %v57_v9 = vpop.eup %56 }
  0x15   :  { %v29_v10 = vmul.f32 %v57_v9, %v28_v8 }
  0x17   :  { %36 = vperm.xlu0 %55, %v29_v10   ;;  %v31_v12 = vmul.f32 %v29_v10, %v21_v3 }
  0x19   :  { %v32_v13 = vsub.f32 %v30_v11, %v31_v12 }
  0x1b   :  { %42 = vperm.xlu0 %55, %v32_v13  }
  0x96   :  { %v37_v14 = vpop.permute.xlu0 %36 }
  0x97   :  { %v39_v16 = vmul.f32 %v37_v14, %v33_v15 }
  0x9a   :  { %v43_v17 = vpop.permute.xlu0 %42 }
  0x9b   :  { %v45_v18 = vadd.f32 %v43_v17, %v39_v16 }
  0x9d   :  { %vm46_vm0 = vcmp.ge.f32.partialorder %v45_v18, 0.0  ;;  %v47_v19 = vmul.f32 0.2, %v45_v18 }
  0x9f   :  { %v48_v20 = vsel %vm46_vm0, %v45_v18, %v47_v19 }
  0xa0   :  { %49 = vst [vmem:[%s112_s5] sm:$0xff] %v48_v20 }

</bundles_post_ra>
